<compile_context>
chip_gen: v7x
topology: tpu7x:2x2x1
jax: 0.10.0
libtpu: 0.0.40
codegen_flags: <defaults>
</compile_context>

<pallas_src>
import functools
import math

import jax
import jax.numpy as jnp
from jax.experimental import pallas as pl
from jax.experimental.pallas import tpu as pltpu

_LANE = 128            # lane-dense width; 64-wide MLP layers are zero-padded to this
_TILE_CAP = 1024       # 512-1024 row tiles already sit near the HBM roofline
_TILE_FLOOR = 512      # don't shrink large-batch tiles below this (per-step overhead)
_MIN_GRID_STEPS = 4    # >=4 steps so v7x megacore gets >=2 steps per TensorCore


def _round_up(x, m):
    return (x + m - 1) // m * m


def _pick_tile(batch, row_align):
    """Batch tile: whole (aligned) batch when tiny, else 512..1024 rows."""
    b_aligned = _round_up(batch, row_align)
    if b_aligned <= _TILE_FLOOR:
        return b_aligned                      # tiny batch: single grid step
    target = _round_up(pl.cdiv(batch, _MIN_GRID_STEPS), row_align)
    return int(min(_TILE_CAP, max(_TILE_FLOOR, min(target, b_aligned))))


# ----------------------------------------------------------------------------
# Pallas kernel: fused 3-layer MLP (+ fused RM concat) -> lane-dense 128 slab
# ----------------------------------------------------------------------------
def _mlp_kernel(*refs, embed_dim, rm_dim, k_in):
    has_rm = rm_dim > 0
    if has_rm:
        (x_ref, rm_ref, w1_ref, b1_ref, w2_ref, b2_ref, w3_ref, b3_ref,
         o_ref) = refs
    else:
        (x_ref, w1_ref, b1_ref, w2_ref, b2_ref, w3_ref, b3_ref, o_ref) = refs

    tile = x_ref.shape[0]
    k_pad = w1_ref.shape[0]
    lane = o_ref.shape[1]

    # uint8 -> bf16 cast in-kernel: HBM input stream stays 1 B/element and the
    # MXU runs single-pass bf16 (minigrid values 0..255 are exact in bf16).
    x = x_ref[...].astype(jnp.bfloat16)
    if k_pad > k_in:
        # Pad the contraction dim to a sublane multiple AFTER the cast so the
        # HBM stream stays at k_in bytes/row; w1's padded rows are zero.
        x = jnp.concatenate(
            [x, jnp.zeros((tile, k_pad - k_in), jnp.bfloat16)], axis=-1)

    # bf16 matmuls with f32 accumulation; bias-add + ReLU in f32.
    h = jnp.dot(x, w1_ref[...], preferred_element_type=jnp.float32) + b1_ref[...]
    h = jnp.maximum(h, 0.0)
    h = jnp.dot(h.astype(jnp.bfloat16), w2_ref[...],
                preferred_element_type=jnp.float32) + b2_ref[...]
    h = jnp.maximum(h, 0.0)
    h = jnp.dot(h.astype(jnp.bfloat16), w3_ref[...],
                preferred_element_type=jnp.float32) + b3_ref[...]

    # h is a (tile, 128) lane-dense slab; lanes >= embed_dim are exactly zero
    # (w3/b3 padded columns are zero).  Fuse the reward-machine concat by
    # placing rm into lanes [embed_dim, embed_dim + rm_dim) of the slab.
    if has_rm:
        rm = rm_ref[...].astype(jnp.float32)
        h = jnp.concatenate(
            [h[:, :embed_dim], rm,
             jnp.zeros((tile, lane - embed_dim - rm_dim), jnp.float32)],
            axis=-1)
    o_ref[...] = h.astype(o_ref.dtype)


@functools.partial(jax.jit, static_argnames=("embed_dim", "out_dtype"))
def _fused_mlp(x_flat, rm, w1, b1, w2, b2, w3, b3, *, embed_dim, out_dtype):
    B, F = x_flat.shape
    has_rm = rm is not None
    rm_dim = rm.shape[1] if has_rm else 0
    out_width = embed_dim + rm_dim

    # Sub-32-bit inputs pack along sublanes -> keep the row tile aligned.
    itemsize = x_flat.dtype.itemsize
    row_align = 32 if itemsize == 1 else (16 if itemsize == 2 else 8)
    tile = _pick_tile(B, row_align)
    Bp = _round_up(B, tile)
    if Bp != B:
        x_flat = jnp.pad(x_flat, ((0, Bp - B), (0, 0)))
        if has_rm:
            rm = jnp.pad(rm, ((0, Bp - B), (0, 0)))

    grid = (Bp // tile,)
    kernel = functools.partial(_mlp_kernel, embed_dim=embed_dim,
                               rm_dim=rm_dim, k_in=F)

    # Batch-tiled activations; tiny weights/biases resident (constant map).
    in_specs = [pl.BlockSpec((tile, F), lambda i: (i, 0))]
    args = [x_flat]
    if has_rm:
        # (tile, rm_dim) lane-pads rm_dim->128 in VMEM, acceptable at
        # tile <= 1024 (<= 512 KiB per buffer; the HBM region is contiguous).
        in_specs.append(pl.BlockSpec((tile, rm_dim), lambda i: (i, 0)))
        args.append(rm)
    for p in (w1, b1, w2, b2, w3, b3):
        in_specs.append(pl.BlockSpec(p.shape, lambda i: (0, 0)))
        args.append(p)

    # Advisory cost estimate: real (unpadded) work (hidden == embed_dim == 64).
    flops = 2 * B * (F * embed_dim + 2 * embed_dim * embed_dim)
    bytes_accessed = (
        B * F * itemsize
        + (B * rm_dim * rm.dtype.itemsize if has_rm else 0)
        + sum(int(p.size) * p.dtype.itemsize for p in (w1, b1, w2, b2, w3, b3))
        + B * out_width * jnp.dtype(out_dtype).itemsize)

    out = pl.pallas_call(
        kernel,
        out_shape=jax.ShapeDtypeStruct((Bp, _LANE), out_dtype),
        grid=grid,
        in_specs=in_specs,
        out_specs=pl.BlockSpec((tile, _LANE), lambda i: (i, 0)),
        compiler_params=pltpu.CompilerParams(
            dimension_semantics=("parallel",)),
        cost_estimate=pl.CostEstimate(
            flops=flops, transcendentals=0, bytes_accessed=bytes_accessed),
    )(*args)
    # Lane-dense slab -> user-visible (B, out_width); this slice fuses into the
    # downstream consumer under jit.
    return out[:B, :out_width]


# ----------------------------------------------------------------------------
# Module-equivalent wrapper
# ----------------------------------------------------------------------------
class MinigridEnvModelPallas:
    """JAX/Pallas port of MinigridEnvModel."""

    HIDDEN_PAD = _LANE  # pad the 64-wide MLP layers to full 128-lane vregs

    def __init__(self, obs_space, rm_update_algo, key, out_dtype=jnp.bfloat16):
        self.image_embedding_size = 64
        self.embedding_size = self.image_embedding_size
        self.rm_update_algo = rm_update_algo
        if self.rm_update_algo != "no_rm":
            self.embedding_size += obs_space["rm_state"]

        n, m, k = obs_space["image"]
        self.in_dim = n * m * k
        self.in_dim_pad = _round_up(self.in_dim, 8)  # sublane-aligned contraction
        # bf16 output halves the dominant HBM stream; pass out_dtype=jnp.float32
        # if the downstream consumer needs full precision.
        self.out_dtype = out_dtype

        def linear_params(key, fan_in, fan_out, pad_in, pad_out):
            kw, kb = jax.random.split(key)
            bound = 1.0 / math.sqrt(fan_in)
            # stored transposed (in, out) so the kernel computes x @ W + b,
            # matching PyTorch's x @ W.T + b.
            w = jax.random.uniform(kw, (fan_in, fan_out), jnp.float32,
                                   minval=-bound, maxval=bound)
            b = jax.random.uniform(kb, (1, fan_out), jnp.float32,
                                   minval=-bound, maxval=bound)
            # zero-pad to lane/sublane-dense shapes; padded rows/cols are zero
            # so padded activation lanes are exactly 0 (ReLU(0 + 0) == 0).
            w = jnp.pad(w, ((0, pad_in - fan_in), (0, pad_out - fan_out)))
            b = jnp.pad(b, ((0, 0), (0, pad_out - fan_out)))
            # weights in bf16 (single-pass MXU); biases stay f32.
            return w.astype(jnp.bfloat16), b

        H = self.HIDDEN_PAD
        k1, k2, k3 = jax.random.split(key, 3)
        self.w1, self.b1 = linear_params(k1, self.in_dim, 64, self.in_dim_pad, H)
        self.w2, self.b2 = linear_params(k2, 64, 64, H, H)
        self.w3, self.b3 = linear_params(k3, 64, self.image_embedding_size, H, H)

    def __call__(self, obs):
        image = obs["image"]
        # reshape only -- the bf16 cast happens in-kernel so the raw (uint8)
        # observation stream stays 1 byte/element over HBM.
        x_flat = image.reshape(image.shape[0], -1)
        if self.rm_update_algo == "no_rm":
            rm = None
        elif self.rm_update_algo in ("tdm", "ibu", "naive"):
            rm = obs["rm_belief"]
        elif self.rm_update_algo == "oracle":
            rm = obs["rm_state"]
        else:
            raise NotImplementedError()
        return _fused_mlp(
            x_flat, rm,
            self.w1, self.b1, self.w2, self.b2, self.w3, self.b3,
            embed_dim=self.image_embedding_size, out_dtype=self.out_dtype)

    def size(self):
        return self.embedding_size


# ----------------------------------------------------------------------------
# Pure-JAX reference for correctness check (f32, HIGHEST precision)
# ----------------------------------------------------------------------------
def _reference_forward(model, obs):
    hp = jax.lax.Precision.HIGHEST
    x = obs["image"].reshape(obs["image"].shape[0], -1).astype(jnp.float32)
    w1 = model.w1.astype(jnp.float32)[: model.in_dim]
    w2 = model.w2.astype(jnp.float32)
    w3 = model.w3.astype(jnp.float32)
    h = jnp.maximum(jnp.dot(x, w1, precision=hp) + model.b1, 0.0)
    h = jnp.maximum(jnp.dot(h, w2, precision=hp) + model.b2, 0.0)
    h = jnp.dot(h, w3, precision=hp) + model.b3
    h = h[:, :model.image_embedding_size]
    if model.rm_update_algo == "no_rm":
        return h
    if model.rm_update_algo in ("tdm", "ibu", "naive"):
        return jnp.concatenate((h, obs["rm_belief"]), axis=1)
    if model.rm_update_algo == "oracle":
        return jnp.concatenate((h, obs["rm_state"]), axis=1)
    raise NotImplementedError()


if __name__ == "__main__":
    key = jax.random.PRNGKey(0)
    k_params, k_img, k_rm, k_params2, k_img2 = jax.random.split(key, 5)

    obs_space = {"image": (7, 7, 3), "rm_state": 4}

    # --- RM-augmented model ("tdm"), uint8 observations, batch 32 -----------
    batch = 32
    image = jax.random.randint(
        k_img, (batch,) + obs_space["image"], 0, 11, dtype=jnp.int32
    ).astype(jnp.uint8)
    rm_belief = jax.random.uniform(
        k_rm, (batch, obs_space["rm_state"]), jnp.float32)
    obs = {"image": image, "rm_belief": rm_belief}

    model = MinigridEnvModelPallas(obs_space, "tdm", k_params)
    out = jax.block_until_ready(model(obs))
    assert out.shape == (batch, model.size()), (out.shape, model.size())
    ref = _reference_forward(model, obs)
    err = float(jnp.max(jnp.abs(out.astype(jnp.float32) - ref)))
    # bf16 activation/output rounding vs f32 HIGHEST reference -> loose tol.
    assert jnp.allclose(out.astype(jnp.float32), ref, atol=5e-2, rtol=5e-2), err

    # --- "no_rm" model, batch not a multiple of the row tile (pad path) -----
    batch2 = 19
    image2 = jax.random.randint(
        k_img2, (batch2,) + obs_space["image"], 0, 11, dtype=jnp.int32
    ).astype(jnp.uint8)
    obs2 = {"image": image2}
    model2 = MinigridEnvModelPallas(obs_space, "no_rm", k_params2)
    out2 = jax.block_until_ready(model2(obs2))
    assert out2.shape == (batch2, model2.size()), (out2.shape, model2.size())
    ref2 = _reference_forward(model2, obs2)
    err2 = float(jnp.max(jnp.abs(out2.astype(jnp.float32) - ref2)))
    assert jnp.allclose(out2.astype(jnp.float32), ref2, atol=5e-2, rtol=5e-2), err2

    print("KERNEL_OK")
</pallas_src>

<mosaic_0001>
module attributes {stable_mosaic.version = 11 : i64} {
  func.func @_mlp_kernel(%arg0: i32, %arg1: memref<32x147xi8, #tpu.memory_space<vmem>>, %arg2: memref<32x4xf32, #tpu.memory_space<vmem>>, %arg3: memref<152x128xbf16, #tpu.memory_space<vmem>>, %arg4: memref<1x128xf32, #tpu.memory_space<vmem>>, %arg5: memref<128x128xbf16, #tpu.memory_space<vmem>>, %arg6: memref<1x128xf32, #tpu.memory_space<vmem>>, %arg7: memref<128x128xbf16, #tpu.memory_space<vmem>>, %arg8: memref<1x128xf32, #tpu.memory_space<vmem>>, %arg9: memref<32x128xbf16, #tpu.memory_space<vmem>>) attributes {dimension_semantics = [#tpu.dimension_semantics<parallel>], iteration_bounds = array<i64: 1>, scalar_prefetch = 0 : i64, scratch_operands = 0 : i64, tpu.core_type = #tpu.core_type<tc>, window_params = [{transform_indices = @transform_0, window_bounds = array<i64: 32, 147>}, {transform_indices = @transform_1, window_bounds = array<i64: 32, 4>}, {pipeline_mode = #tpu.pipeline_mode<synchronous>, transform_indices = @transform_2, window_bounds = array<i64: 152, 128>}, {pipeline_mode = #tpu.pipeline_mode<synchronous>, transform_indices = @transform_3, window_bounds = array<i64: 1, 128>}, {pipeline_mode = #tpu.pipeline_mode<synchronous>, transform_indices = @transform_4, window_bounds = array<i64: 128, 128>}, {pipeline_mode = #tpu.pipeline_mode<synchronous>, transform_indices = @transform_5, window_bounds = array<i64: 1, 128>}, {pipeline_mode = #tpu.pipeline_mode<synchronous>, transform_indices = @transform_6, window_bounds = array<i64: 128, 128>}, {pipeline_mode = #tpu.pipeline_mode<synchronous>, transform_indices = @transform_7, window_bounds = array<i64: 1, 128>}, {transform_indices = @transform_8, window_bounds = array<i64: 32, 128>}]} {
    %c0 = arith.constant 0 : index
    %c0_0 = arith.constant 0 : index
    %0 = vector.load %arg1[%c0, %c0_0] : memref<32x147xi8, #tpu.memory_space<vmem>>, vector<32x147xi8>
    %1 = arith.uitofp %0 : vector<32x147xi8> to vector<32x147xbf16>
    %cst = arith.constant 0.000000e+00 : bf16
    %2 = vector.broadcast %cst : bf16 to vector<32x5xbf16>
    %3 = tpu.concatenate %1, %2 in 1 : vector<32x147xbf16>, vector<32x5xbf16> -> vector<32x152xbf16>
    %c0_1 = arith.constant 0 : index
    %c0_2 = arith.constant 0 : index
    %4 = vector.load %arg3[%c0_1, %c0_2] : memref<152x128xbf16, #tpu.memory_space<vmem>>, vector<152x128xbf16>
    %cst_3 = arith.constant dense<0.000000e+00> : vector<32x128xf32>
    %5 = tpu.matmul %3, %4, %cst_3 {dimension_numbers = #tpu.dot_dimension_numbers<[1], [0], [0], [1], [0, 0, 1, 1], [], []>} : vector<32x152xbf16>, vector<152x128xbf16>, vector<32x128xf32> -> vector<32x128xf32>
    %c0_4 = arith.constant 0 : index
    %c0_5 = arith.constant 0 : index
    %6 = vector.load %arg4[%c0_4, %c0_5] : memref<1x128xf32, #tpu.memory_space<vmem>>, vector<1x128xf32>
    %7 = vector.broadcast %6 : vector<1x128xf32> to vector<32x128xf32>
    %8 = arith.addf %5, %7 : vector<32x128xf32>
    %cst_6 = arith.constant 0.000000e+00 : f32
    %9 = vector.broadcast %cst_6 : f32 to vector<32x128xf32>
    %10 = arith.maximumf %8, %9 : vector<32x128xf32>
    %11 = arith.truncf %10 : vector<32x128xf32> to vector<32x128xbf16>
    %c0_7 = arith.constant 0 : index
    %c0_8 = arith.constant 0 : index
    %12 = vector.load %arg5[%c0_7, %c0_8] : memref<128x128xbf16, #tpu.memory_space<vmem>>, vector<128x128xbf16>
    %cst_9 = arith.constant dense<0.000000e+00> : vector<32x128xf32>
    %13 = tpu.matmul %11, %12, %cst_9 {dimension_numbers = #tpu.dot_dimension_numbers<[1], [0], [0], [1], [0, 0, 1, 1], [], []>} : vector<32x128xbf16>, vector<128x128xbf16>, vector<32x128xf32> -> vector<32x128xf32>
    %c0_10 = arith.constant 0 : index
    %c0_11 = arith.constant 0 : index
    %14 = vector.load %arg6[%c0_10, %c0_11] : memref<1x128xf32, #tpu.memory_space<vmem>>, vector<1x128xf32>
    %15 = vector.broadcast %14 : vector<1x128xf32> to vector<32x128xf32>
    %16 = arith.addf %13, %15 : vector<32x128xf32>
    %cst_12 = arith.constant 0.000000e+00 : f32
    %17 = vector.broadcast %cst_12 : f32 to vector<32x128xf32>
    %18 = arith.maximumf %16, %17 : vector<32x128xf32>
    %19 = arith.truncf %18 : vector<32x128xf32> to vector<32x128xbf16>
    %c0_13 = arith.constant 0 : index
    %c0_14 = arith.constant 0 : index
    %20 = vector.load %arg7[%c0_13, %c0_14] : memref<128x128xbf16, #tpu.memory_space<vmem>>, vector<128x128xbf16>
    %cst_15 = arith.constant dense<0.000000e+00> : vector<32x128xf32>
    %21 = tpu.matmul %19, %20, %cst_15 {dimension_numbers = #tpu.dot_dimension_numbers<[1], [0], [0], [1], [0, 0, 1, 1], [], []>} : vector<32x128xbf16>, vector<128x128xbf16>, vector<32x128xf32> -> vector<32x128xf32>
    %c0_16 = arith.constant 0 : index
    %c0_17 = arith.constant 0 : index
    %22 = vector.load %arg8[%c0_16, %c0_17] : memref<1x128xf32, #tpu.memory_space<vmem>>, vector<1x128xf32>
    %23 = vector.broadcast %22 : vector<1x128xf32> to vector<32x128xf32>
    %24 = arith.addf %21, %23 : vector<32x128xf32>
    %c0_18 = arith.constant 0 : index
    %c0_19 = arith.constant 0 : index
    %25 = vector.load %arg2[%c0_18, %c0_19] : memref<32x4xf32, #tpu.memory_space<vmem>>, vector<32x4xf32>
    %26 = vector.extract_strided_slice %24 {offsets = [0, 0], sizes = [32, 64], strides = [1, 1]} : vector<32x128xf32> to vector<32x64xf32>
    %cst_20 = arith.constant 0.000000e+00 : f32
    %27 = vector.broadcast %cst_20 : f32 to vector<32x60xf32>
    %28 = tpu.concatenate %26, %25, %27 in 1 : vector<32x64xf32>, vector<32x4xf32>, vector<32x60xf32> -> vector<32x128xf32>
    %29 = arith.truncf %28 : vector<32x128xf32> to vector<32x128xbf16>
    %c0_21 = arith.constant 0 : index
    %c0_22 = arith.constant 0 : index
    %30 = vector.load %arg9[%c0_21, %c0_22] : memref<32x128xbf16, #tpu.memory_space<vmem>>, vector<32x128xbf16>
    tpu.vector_store %arg9[%c0_21, %c0_22], %29 {strides = array<i32>} : memref<32x128xbf16, #tpu.memory_space<vmem>>, vector<32x128xbf16>,
    return
  }
  func.func @transform_0(%arg0: i32) -> (i32, i32) {
    %c0_i32 = arith.constant 0 : i32
    %c0_i32_0 = arith.constant 0 : i32
    return %arg0, %c0_i32 : i32, i32
  }
  func.func @transform_1(%arg0: i32) -> (i32, i32) {
    %c0_i32 = arith.constant 0 : i32
    %c0_i32_0 = arith.constant 0 : i32
    return %arg0, %c0_i32 : i32, i32
  }
  func.func @transform_2(%arg0: i32) -> (i32, i32) {
    %c0_i32 = arith.constant 0 : i32
    %c0_i32_0 = arith.constant 0 : i32
    %c0_i32_1 = arith.constant 0 : i32
    return %c0_i32, %c0_i32_0 : i32, i32
  }
  func.func @transform_3(%arg0: i32) -> (i32, i32) {
    %c0_i32 = arith.constant 0 : i32
    %c0_i32_0 = arith.constant 0 : i32
    %c0_i32_1 = arith.constant 0 : i32
    return %c0_i32, %c0_i32_0 : i32, i32
  }
  func.func @transform_4(%arg0: i32) -> (i32, i32) {
    %c0_i32 = arith.constant 0 : i32
    %c0_i32_0 = arith.constant 0 : i32
    %c0_i32_1 = arith.constant 0 : i32
    return %c0_i32, %c0_i32_0 : i32, i32
  }
  func.func @transform_5(%arg0: i32) -> (i32, i32) {
    %c0_i32 = arith.constant 0 : i32
    %c0_i32_0 = arith.constant 0 : i32
    %c0_i32_1 = arith.constant 0 : i32
    return %c0_i32, %c0_i32_0 : i32, i32
  }
  func.func @transform_6(%arg0: i32) -> (i32, i32) {
    %c0_i32 = arith.constant 0 : i32
    %c0_i32_0 = arith.constant 0 : i32
    %c0_i32_1 = arith.constant 0 : i32
    return %c0_i32, %c0_i32_0 : i32, i32
  }
  func.func @transform_7(%arg0: i32) -> (i32, i32) {
    %c0_i32 = arith.constant 0 : i32
    %c0_i32_0 = arith.constant 0 : i32
    %c0_i32_1 = arith.constant 0 : i32
    return %c0_i32, %c0_i32_0 : i32, i32
  }
  func.func @transform_8(%arg0: i32) -> (i32, i32) {
    %c0_i32 = arith.constant 0 : i32
    %c0_i32_0 = arith.constant 0 : i32
    return %arg0, %c0_i32 : i32, i32
  }
}

</mosaic_0001>

<bundles_post_ra>
// kernel: _fused_mlp.1
= control target key start
LH: loop header
LB: loop body
LE: loop exit
PB: predicated region body
PF: predicated region fallthrough
CT: control target
= control target key end

     0   :  { %13 = vsyncpa [#allocation3], 0  ;;  %s948_s0 = inlined_call_operand.vmem [shape: u8[32,147], index: 0, kind: input, shape index: {}]   ;;  %s949_s1 = inlined_call_operand.vmem [shape: f32[32,4], index: 1, kind: input, shape index: {}]   ;;  %s950_s2 = inlined_call_operand.hbm [shape: bf16[152,128], index: 2, kind: input, shape index: {}]   ;;  %s951_s3 = inlined_call_operand.vmem [shape: f32[1,128], index: 3, kind: input, shape index: {}]   ;;  %s952_s4 = inlined_call_operand.hbm [shape: bf16[128,128], index: 4, kind: input, shape index: {}]   ;;  %s953_s5 = inlined_call_operand.vmem [shape: f32[1,128], index: 5, kind: input, shape index: {}]   ;;  %s954_s6 = inlined_call_operand.hbm [shape: bf16[128,128], index: 6, kind: input, shape index: {}]   ;;  %s955_s7 = inlined_call_operand.vmem [shape: f32[1,128], index: 7, kind: input, shape index: {}]   ;;  %s956_s8 = inlined_call_operand.hbm [shape: bf16[32,128], index: 8, kind: output, shape index: {}]  }
   0x1   :  { %14 = vsyncpa [#allocation6], 0 }
   0x2   :  { %15 = vsyncpa [#allocation4], 0  ;;  %s792_s27 = smov [#allocation5]   ;;  %s793_s29 = smov [#allocation2]  }
   0x3   :  { %s39_s28 = sshll.u32 %s792_s27, 4  ;;  %s25_s30 = sshll.u32 %s793_s29, 4  ;;  %s40_s28 = int_to_ptr.vmem [resolvable:$true] %s39_s28  ;;  %s844_s30 = int_to_ptr.vmem [resolvable:$true] %s25_s30 }
   0x4   :  { %s698_s11 = scalar_lea.hbm %s952_s4, 1024 }
   0x5   :  { %p699_p0 = scmp.ne.s32.totalorder %s952_s4, %s698_s11  ;;  %p702_p1 = scmp.lt.u32.totalorder %s698_s11, %s952_s4 }
   0x7   :  { %p704_p2 = pnand %p702_p1, %p699_p0 }
   0x9   :  { %707 = shalt.err (!%p704_p2)
}
   0xa   :  { %s708_s16 = scalar_lea.vmem %s40_s28, 1024  ;;  %p713_p4 = scmp.lt.s32.totalorder %s40_s28, %s40_s28 }
   0xb   :  { %p709_p3 = scmp.ne.s32.totalorder %s40_s28, %s708_s16  ;;  %p714_p5 = scmp.lt.s32.totalorder %s708_s16, %s708_s16 }
   0xd   :  { %p715_p6 = por %p714_p5, %p713_p4 }
   0xf   :  { %p716_p7 = pnand %p715_p6, %p709_p3 }
  0x11   :  { %719 = shalt.err (!%p716_p7)
}
  0x12   :  { %s794_s17 = smov 64   ;;  %s795_s18 = smov 4  }
  0x13   :  { %45 = dma.hbm_to_vmem [thread:$0]  %s952_s4, 1024, %s40_s28, [#allocation6], %s794_s17, %s794_s17, %s795_s18  }
  0x14   :  { %s720_s23 = scalar_lea.hbm %s950_s2, 1216 }
  0x15   :  { %p721_p8 = scmp.ne.s32.totalorder %s950_s2, %s720_s23  ;;  %p724_p9 = scmp.lt.u32.totalorder %s720_s23, %s950_s2 }
  0x17   :  { %p726_p10 = pnand %p724_p9, %p721_p8 }
  0x19   :  { %729 = shalt.err (!%p726_p10)
}
  0x1a   :  { %s730_s29 = scalar_lea.vmem %s844_s30, 1216  ;;  %p735_p12 = scmp.lt.s32.totalorder %s844_s30, %s844_s30 }
  0x1b   :  { %p731_p11 = scmp.ne.s32.totalorder %s844_s30, %s730_s29  ;;  %p736_p13 = scmp.lt.s32.totalorder %s730_s29, %s730_s29 }
  0x1d   :  { %p737_p0 = por %p736_p13, %p735_p12 }
  0x1f   :  { %p738_p1 = pnand %p737_p0, %p731_p11 }
  0x21   :  { %741 = shalt.err (!%p738_p1)
}
  0x22   :  { %31 = dma.hbm_to_vmem [thread:$0]  %s950_s2, 1216, %s844_s30, [#allocation3], %s794_s17, %s794_s17, %s795_s18  }
  0x23   :  { %s796_s9 = smov [#allocation7]   ;;  %s742_s13 = scalar_lea.hbm %s954_s6, 1024 }
  0x24   :  { %s53_s10 = sshll.u32 %s796_s9, 4  ;;  %p743_p2 = scmp.ne.s32.totalorder %s954_s6, %s742_s13  ;;  %s54_s10 = int_to_ptr.vmem [resolvable:$true] %s53_s10 }
  0x25   :  { %p746_p3 = scmp.lt.u32.totalorder %s742_s13, %s954_s6 }
  0x27   :  { %p748_p4 = pnand %p746_p3, %p743_p2 }
  0x29   :  { %751 = shalt.err (!%p748_p4)
}
  0x2a   :  { %s752_s20 = scalar_lea.vmem %s54_s10, 1024  ;;  %p757_p6 = scmp.lt.s32.totalorder %s54_s10, %s54_s10 }
  0x2b   :  { %p753_p5 = scmp.ne.s32.totalorder %s54_s10, %s752_s20  ;;  %p758_p7 = scmp.lt.s32.totalorder %s752_s20, %s752_s20 }
  0x2d   :  { %p759_p8 = por %p758_p7, %p757_p6 }
  0x2f   :  { %p760_p9 = pnand %p759_p8, %p753_p5 }
  0x31   :  { %763 = shalt.err (!%p760_p9)
}
  0x32   :  { %59 = dma.hbm_to_vmem [thread:$0]  %s954_s6, 1024, %s54_s10, [#allocation6], %s794_s17, %s794_s17, %s795_s18  }
  0x33   :  { %786 = dma.done.wait [#allocation3], 1216  }
  0x34   :  { %787 = vsyncadd [#allocation3], 4294966080 }
  0x35   :  { %788 = dma.done.wait [#allocation6], 2048  }
  0x36   :  { %789 = vsyncadd [#allocation6], 4294965248  ;;  %v797_v0 = vmov 0   ;;  %v672_v1 = vld [vmem:[#allocation2] sm:$0xff]   ;;  %v673_v2 = vld [vmem:[#allocation2 + $0x8] sm:$0xff]   ;;  %vm78_vm0 = vcmask 154624  }
  0x37   :  { %176 = vmatprep.subr.bf16.mxu0 %v797_v0  ;;  %v674_v3 = vld [vmem:[#allocation2 + $0x10] sm:$0xff]   ;;  %v73_v4 = vld [vmem:[%s948_s0 + $0x8] sm:$0xff]  ;;  %v675_v5 = vld [vmem:[#allocation2 + $0x18] sm:$0xff]   ;;  %vm167_vm1 = vcmask 195584   ;;  %vm172_vm2 = vcmask 1043456   ;;  %vm497_vm3 = vcmask 523264  }
  0x38   :  { %177 = vmatpush1.bf16.msra.mxu0 %v672_v1  ;;  %v75_v6 = vunpack.c.l.u8.bf16 %v73_v4  ;;  %v682_v7 = vld [vmem:[#allocation5] sm:$0xff]   ;;  %v683_v9 = vld [vmem:[#allocation5 + $0x8] sm:$0xff]   ;;  %v676_v10 = vld [vmem:[#allocation2 + $0x20] sm:$0xff]   ;;  %v77_v20 = vunpack.c.h.u8.bf16 %v73_v4  ;;  %vm502_vm4 = vcmask 556032  }
  0x39   :  { %178 = vmatprep.subr.bf16.mxu0 %v797_v0  ;;  %615 = vmatprep.subr.bf16.mxu1 %v682_v7  ;;  %v684_v11 = vld [vmem:[#allocation5 + $0x10] sm:$0xff]   ;;  %v677_v12 = vld [vmem:[#allocation2 + $0x28] sm:$0xff]   ;;  %v678_v14 = vld [vmem:[#allocation2 + $0x30] sm:$0xff]  }
  0x3a   :  { %v81_v8 = vsel %vm78_vm0, %v75_v6, 0  ;;  %616 = vmatpush3.bf16.msra.mxu1 %v682_v7  ;;  %v685_v13 = vld [vmem:[#allocation5 + $0x18] sm:$0xff]   ;;  %v679_v15 = vld [vmem:[#allocation2 + $0x38] sm:$0xff]   ;;  %v83_v22 = vsel %vm78_vm0, %v77_v20, 0  ;;  %v686_v24 = vld [vmem:[#allocation5 + $0x20] sm:$0xff]  }
  0x3b   :  { %556 = vmatprep.mubr.msk.bf16.mxu0 %vm167_vm1, %v81_v8  ;;  %617 = vmatprep.subr.bf16.mxu1 %v683_v9  ;;  %v680_v16 = vld [vmem:[#allocation2 + $0x40] sm:$0xff]   ;;  %v681_v17 = vld [vmem:[#allocation2 + $0x48] ss:$0 sps:$4 sm:$0xff]   ;;  %v687_v25 = vld [vmem:[#allocation5 + $0x28] sm:$0xff]  }
  0x3c   :  { %179 = vmatpush1.bf16.msra.mxu0 %v673_v2  ;;  %v72_v18 = vld [vmem:[%s948_s0] sm:$0xff]  ;;  %v174_v19 = vsel %vm172_vm2, %v681_v17, 0  ;;  %v690_v28 = vld [vmem:[#allocation7] sm:$0xff]   ;;  %v691_v48 = vld [vmem:[#allocation7 + $0x8] sm:$0xff]  }
  0x3d   :  { %180 = vmatprep.subr.bf16.mxu0 %v797_v0  ;;  %v74_v21 = vunpack.c.l.u8.bf16 %v72_v18  ;;  %v76_v23 = vunpack.c.h.u8.bf16 %v72_v18  ;;  %v688_v26 = vld [vmem:[#allocation5 + $0x30] sm:$0xff]   ;;  %v689_v27 = vld [vmem:[#allocation5 + $0x38] sm:$0xff]   ;;  %v694_v51 = vld [vmem:[#allocation7 + $0x20] sm:$0xff]  }
  0x3e   :  { %618 = vmatpush3.bf16.msra.mxu1 %v683_v9  ;;  %v545_v29 = vld [vmem:[%s951_s3] ss:$0 sm:$0xff]  ;;  %v693_v50 = vld [vmem:[#allocation7 + $0x18] sm:$0xff]   ;;  %v695_v52 = vld [vmem:[#allocation7 + $0x28] sm:$0xff]  }
  0x3f   :  { %619 = vmatprep.subr.bf16.mxu1 %v684_v11  ;;  %v692_v49 = vld [vmem:[#allocation7 + $0x10] sm:$0xff]   ;;  %v697_v54 = vld [vmem:[#allocation7 + $0x38] sm:$0xff]   ;;  %v479_v57 = vld [vmem:[%s949_s1 + $0x10] sm:$0xff] }
  0x40   :  { %181 = vmatpush1.bf16.msra.mxu0 %v674_v3  ;;  %v696_v53 = vld [vmem:[#allocation7 + $0x30] sm:$0xff]   ;;  %v478_v56 = vld [vmem:[%s949_s1 + $0x8] sm:$0xff] }
  0x41   :  { %182 = vmatprep.subr.bf16.mxu0 %v797_v0  ;;  %v477_v55 = vld [vmem:[%s949_s1] sm:$0xff]  ;;  %v480_v59 = vld [vmem:[%s949_s1 + $0x18] sm:$0xff] }
  0x42   :  { %620 = vmatpush3.bf16.msra.mxu1 %v684_v11  ;;  %v662_v58 = vpack.i.bf16 %v478_v56, %v477_v55  ;;  %v667_v60 = vpack.i.bf16 %v480_v59, %v479_v57  ;;  %v558_v61 = vld [vmem:[%s953_s5] ss:$0 sm:$0xff] }
  0x43   :  { %621 = vmatprep.subr.bf16.mxu1 %v685_v13 }
  0x44   :  { %183 = vmatpush1.bf16.msra.mxu0 %v675_v5  ;;  %663 = vrot.lane.b32.xlu0 %v662_v58, %s794_s17 }
  0x45   :  { %184 = vmatprep.subr.bf16.mxu0 %v797_v0 }
  0x46   :  { %622 = vmatpush3.bf16.msra.mxu1 %v685_v13 }
  0x47   :  { %623 = vmatprep.subr.bf16.mxu1 %v686_v24 }
  0x48   :  { %185 = vmatpush1.bf16.msra.mxu0 %v676_v10  ;;  %668 = vrot.lane.b32.xlu0 %v667_v60, %s794_s17 }
  0x49   :  { %186 = vmatprep.subr.bf16.mxu0 %v797_v0 }
  0x4a   :  { %624 = vmatpush3.bf16.msra.mxu1 %v686_v24 }
  0x4b   :  { %625 = vmatprep.subr.bf16.mxu1 %v687_v25 }
  0x4c   :  { %187 = vmatpush1.bf16.msra.mxu0 %v677_v12 }
  0x4d   :  { %188 = vmatprep.subr.bf16.mxu0 %v797_v0 }
  0x4e   :  { %626 = vmatpush3.bf16.msra.mxu1 %v687_v25 }
  0x4f   :  { %627 = vmatprep.subr.bf16.mxu1 %v688_v26 }
  0x50   :  { %189 = vmatpush1.bf16.msra.mxu0 %v678_v14  ;;  %v567_v14 = vld [vmem:[%s955_s7] ss:$0 sm:$0xff]  ;;  %s798_s7 = smov [#allocation8]  }
  0x51   :  { %190 = vmatprep.subr.bf16.mxu0 %v797_v0  ;;  %s532_s12 = sshll.u32 %s798_s7, 4  ;;  %s533_s12 = int_to_ptr.vmem [resolvable:$true] %s532_s12 }
  0x52   :  { %628 = vmatpush3.bf16.msra.mxu1 %v688_v26  ;;  %s764_s13 = scalar_lea.vmem %s533_s12, 256  ;;  %p769_p11 = scmp.lt.s32.totalorder %s533_s12, %s533_s12 }
  0x53   :  { %629 = vmatprep.subr.bf16.mxu1 %v689_v27  ;;  %p765_p10 = scmp.ne.s32.totalorder %s533_s12, %s764_s13  ;;  %p770_p12 = scmp.lt.s32.totalorder %s764_s13, %s764_s13 }
  0x54   :  { %191 = vmatpush1.bf16.msra.mxu0 %v679_v15 }
  0x55   :  { %192 = vmatprep.subr.bf16.mxu0 %v797_v0  ;;  %p771_p13 = por %p770_p12, %p769_p11 }
  0x56   :  { %630 = vmatpush3.bf16.msra.mxu1 %v689_v27 }
  0x57   :  { %635 = vmatprep.subr.bf16.mxu1 %v690_v28  ;;  %p772_p0 = pnand %p771_p13, %p765_p10 }
  0x58   :  { %193 = vmatpush1.bf16.msra.mxu0 %v680_v16 }
  0x59   :  { %194 = vmatprep.subr.bf16.mxu0 %v797_v0 }
  0x5c   :  { %195 = vmatpush1.bf16.msra.mxu0 %v174_v19 }
  0x5f   :  { %209 = vmatmul.mubr.bf16.vlgmr.msra.gmra.mrb[0].mxu0 %v74_v21 }
  0x60   :  { %557 = vmatprep.mubr.msk.bf16.mxu0 %vm167_vm1, %v83_v22 }
  0x67   :  { %217 = vmatmul.mubr.bf16.gmra.mrb[4].mxu0 %v76_v23 }
  0xb6   :  { %v664_v12 = vpop.permute.xlu0 %663 }
  0xb7   :  { %v665_v20 = vunpack.i.l.bf16 %v664_v12  ;;  %v666_v26 = vunpack.i.h.bf16 %v664_v12 }
  0xba   :  { %v669_v13 = vpop.permute.xlu0 %668 }
  0xbb   :  { %v670_v15 = vunpack.i.l.bf16 %v669_v13  ;;  %v671_v17 = vunpack.i.h.bf16 %v669_v13 }
 0x132   :  { %v210_v30 = vpop.f32.mrb[0].mxu0 }
 0x133   :  { %v211_v31 = vadd.f32 %v545_v29, %v210_v30  ;;  %v212_v32 = vpop.f32.mrb[1].mxu0 }
 0x134   :  { %v213_v33 = vpop.f32.mrb[2].mxu0 }
 0x135   :  { %v214_v34 = vadd.f32 %v545_v29, %v213_v33  ;;  %v215_v35 = vpop.f32.mrb[3].mxu0  ;;  %v225_v36 = vmax.f32 %v211_v31, 0.0 }
 0x137   :  { %v226_v37 = vmax.f32 %v214_v34, 0.0 }
 0x139   :  { %v229_v38 = vpack.c.bf16 %v226_v37, %v225_v36 }
 0x13a   :  { %v218_v39 = vpop.f32.mrb[4].mxu0 }
 0x13b   :  { %v219_v40 = vadd.f32 %v545_v29, %v218_v39  ;;  %v220_v41 = vpop.f32.mrb[5].mxu0  ;;  %631 = vmatprep.mubr.bf16.mxu1 %v229_v38 }
 0x13c   :  { %v221_v42 = vpop.f32.mrb[6].mxu0 }
 0x13d   :  { %v222_v43 = vadd.f32 %v545_v29, %v221_v42  ;;  %v223_v44 = vpop.f32.mrb[7].mxu0  ;;  %v227_v45 = vmax.f32 %v219_v40, 0.0 }
 0x13f   :  { %v228_v46 = vmax.f32 %v222_v43, 0.0 }
 0x141   :  { %v230_v47 = vpack.c.bf16 %v228_v46, %v227_v45 }
 0x143   :  { %632 = vmatmul.mubr.bf16.vlgmr.msra.gmra.mrb[0].mxu1 %v230_v47 }
 0x144   :  { %636 = vmatpush3.bf16.msra.mxu1 %v690_v28 }
 0x145   :  { %637 = vmatprep.subr.bf16.mxu1 %v691_v48 }
 0x148   :  { %638 = vmatpush3.bf16.msra.mxu1 %v691_v48 }
 0x149   :  { %639 = vmatprep.subr.bf16.mxu1 %v692_v49 }
 0x14c   :  { %640 = vmatpush3.bf16.msra.mxu1 %v692_v49 }
 0x14d   :  { %641 = vmatprep.subr.bf16.mxu1 %v693_v50 }
 0x150   :  { %642 = vmatpush3.bf16.msra.mxu1 %v693_v50 }
 0x151   :  { %643 = vmatprep.subr.bf16.mxu1 %v694_v51 }
 0x154   :  { %644 = vmatpush3.bf16.msra.mxu1 %v694_v51 }
 0x155   :  { %645 = vmatprep.subr.bf16.mxu1 %v695_v52 }
 0x158   :  { %646 = vmatpush3.bf16.msra.mxu1 %v695_v52 }
 0x159   :  { %647 = vmatprep.subr.bf16.mxu1 %v696_v53 }
 0x15c   :  { %648 = vmatpush3.bf16.msra.mxu1 %v696_v53 }
 0x15d   :  { %649 = vmatprep.subr.bf16.mxu1 %v697_v54 }
 0x160   :  { %650 = vmatpush3.bf16.msra.mxu1 %v697_v54 }
 0x216   :  { %v633_v62 = vpop.f32.mrb[0].mxu1 }
 0x217   :  { %v345_v63 = vadd.f32 %v633_v62, %v558_v61  ;;  %v336_v0 = vpop.f32.mrb[1].mxu1 }
 0x218   :  { %v337_v1 = vadd.f32 %v558_v61, %v336_v0  ;;  %v634_v2 = vpop.f32.mrb[2].mxu1 }
 0x219   :  { %v348_v3 = vadd.f32 %v634_v2, %v558_v61  ;;  %v339_v4 = vpop.f32.mrb[3].mxu1  ;;  %v353_v6 = vmax.f32 %v345_v63, 0.0 }
 0x21a   :  { %v340_v5 = vadd.f32 %v558_v61, %v339_v4  ;;  %v351_v8 = vmax.f32 %v337_v1, 0.0 }
 0x21b   :  { %v354_v7 = vmax.f32 %v348_v3, 0.0 }
 0x21c   :  { %v352_v9 = vmax.f32 %v340_v5, 0.0 }
 0x21d   :  { %v356_v10 = vpack.c.bf16 %v354_v7, %v353_v6 }
 0x21e   :  { %v355_v11 = vpack.c.bf16 %v352_v9, %v351_v8 }
 0x220   :  { %651 = vmatprep.mubr.bf16.mxu1 %v355_v11 }
 0x221   :  { %652 = vmatmul.mubr.bf16.vlgmr.msra.gmra.mrb[4].mxu1 %v356_v10 }
 0x2f4   :  { %v653_v16 = vpop.f32.mrb[4].mxu1 }
 0x2f5   :  { %v471_v18 = vadd.f32 %v653_v16, %v567_v14  ;;  %v462_v19 = vpop.f32.mrb[5].mxu1 }
 0x2f6   :  { %v463_v21 = vadd.f32 %v567_v14, %v462_v19  ;;  %v654_v22 = vpop.f32.mrb[6].mxu1 }
 0x2f7   :  { %v500_v23 = vsel %vm497_vm3, %v471_v18, %v670_v15  ;;  %v474_v24 = vadd.f32 %v654_v22, %v567_v14  ;;  %v465_v25 = vpop.f32.mrb[7].mxu1 }
 0x2f8   :  { %v498_v27 = vsel %vm497_vm3, %v463_v21, %v665_v20  ;;  %v466_v28 = vadd.f32 %v567_v14, %v465_v25  ;;  %v505_v30 = vsel %vm502_vm4, %v500_v23, 0.0 }
 0x2f9   :  { %v501_v29 = vsel %vm497_vm3, %v474_v24, %v671_v17  ;;  %v503_v33 = vsel %vm502_vm4, %v498_v27, 0.0 }
 0x2fa   :  { %v506_v31 = vsel %vm502_vm4, %v501_v29, 0.0  ;;  %v499_v32 = vsel %vm497_vm3, %v466_v28, %v666_v26 }
 0x2fb   :  { %v504_v34 = vsel %vm502_vm4, %v499_v32, 0.0  ;;  %v592_v35 = vpack.c.bf16 %v506_v31, %v505_v30 }
 0x2fc   :  { %v587_v36 = vpack.c.bf16 %v504_v34, %v503_v33 }
 0x2fd   :  { %594 = vst [vmem:[#allocation8 + $0x8] sm:$0xff] %v592_v35  }
 0x2fe   :  { %588 = vst [vmem:[#allocation8] sm:$0xff] %v587_v36  }
 0x2ff   :  { %775 = shalt.err (!%p772_p0)
}
 0x300   :  { %s776_s16 = scalar_lea.hbm %s956_s8, 256 }
 0x301   :  { %p777_p1 = scmp.ne.s32.totalorder %s956_s8, %s776_s16  ;;  %p780_p2 = scmp.lt.u32.totalorder %s776_s16, %s956_s8 }
 0x303   :  { %p782_p3 = pnand %p780_p2, %p777_p1 }
 0x305   :  { %785 = shalt.err (!%p782_p3)
}
 0x306   :  { %538 = dma.vmem_to_hbm [thread:$0]  %s533_s12, 256, %s956_s8, [#allocation4], %s794_s17, %s794_s17, %s795_s18  }
 0x307   :  { %790 = dma.done.wait [#allocation4], 256  }
 0x308   :  { %791 = vsyncadd [#allocation4], 4294967040 }
 0x309   :  { %542 = vsyncpa [#allocation3], 1 }
 0x30a   :  { %543 = vsyncpa [#allocation6], 1 }
 0x30b   :  { %544 = vsyncpa [#allocation4], 1 }

</bundles_post_ra>
